<compile_context>
chip_gen: v7x
topology: tpu7x:2x2x1
jax: 0.10.0
libtpu: 0.0.40
codegen_flags: <defaults>
</compile_context>

<pallas_src>
import jax
import jax.numpy as jnp
from jax.experimental import pallas as pl
from jax.experimental.pallas import tpu as pltpu


def _round_up(x, m):
    return ((x + m - 1) // m) * m


def output_block_kernel(cs_ref, cnt_ref,                       # scalar prefetch (SMEM)
                        rbf_ref, x_ref, idx_ref,               # per-edge-chunk tiles
                        w_rbf_ref, ws_ref, bs_ref, w_out_ref,  # resident weights
                        out_ref,                               # [TN, O_pad] node tile
                        acc_ref, rows_ref):                    # VMEM scratch
    nb = pl.program_id(0)            # node-tile index
    c = pl.program_id(1)             # edge-chunk step within this node tile
    TN = acc_ref.shape[0]
    cnt = cnt_ref[nb]

    @pl.when(c == 0)
    def _first_step():
        # Row iota for the one-hot scatter: built once per node tile, then
        # re-loaded (vld slots) on every chunk instead of re-generated (VALU).
        rows_ref[...] = jax.lax.broadcasted_iota(jnp.int32, rows_ref.shape, 0)

        # Empty node tiles never hit the accumulate path; zero them here.
        @pl.when(cnt == 0)
        def _():
            acc_ref[...] = jnp.zeros_like(acc_ref)

    # Only accumulate chunks that actually contain edges of this node tile.
    @pl.when(c < cnt)
    def _accumulate():
        # per-edge transform: (rbf @ W_rbf^T) * x        -> [TE, H_pad]
        g = jnp.dot(rbf_ref[...], w_rbf_ref[...],
                    preferred_element_type=jnp.float32)
        h = (g * x_ref[...].astype(jnp.float32)).astype(jnp.bfloat16)

        # scatter-add restricted to this node tile via a [TN, TE] one-hot (MXU)
        local = idx_ref[...] - nb * TN                           # [1, TE] int32
        onehot = (local == rows_ref[...]).astype(jnp.bfloat16)   # exact 0 / 1
        contrib = jnp.dot(onehot, h, preferred_element_type=jnp.float32)

        @pl.when(c == 0)
        def _():
            acc_ref[...] = contrib        # first chunk assigns (skip zero fill)

        @pl.when(c > 0)
        def _():
            acc_ref[...] += contrib

    # After the last chunk step: fused MLP + final projection for this tile.
    @pl.when(c == pl.num_programs(1) - 1)
    def _finalize():
        y = acc_ref[...]                                       # [TN, H_pad] f32
        for l in range(ws_ref.shape[0]):                       # static unroll
            y = jax.nn.silu(
                jnp.dot(y.astype(jnp.bfloat16), ws_ref[l],
                        preferred_element_type=jnp.float32) + bs_ref[l])
        out_ref[...] = jnp.dot(y.astype(jnp.bfloat16), w_out_ref[...],
                               preferred_element_type=jnp.float32)


def output_block_forward(rbf, x, idx, w_rbf, ws, bs, w_out, num_nodes,
                         *, edge_tile=1024, node_tile=128):
    E, R = rbf.shape
    H = x.shape[1]
    L = ws.shape[0]
    O = w_out.shape[0]

    # lane-dense padded channel sizes (multiples of 128)
    H_pad = _round_up(H, 128)
    O_pad = _round_up(O, 128)

    TE = min(edge_tile, _round_up(E, 128))
    TN = min(node_tile, _round_up(num_nodes, 8))
    E_pad = _round_up(E, TE)
    N_pad = _round_up(num_nodes, TN)
    num_chunks = E_pad // TE
    num_node_blocks = N_pad // TN

    # ---- device-side preprocessing: sort edges by destination node ---------
    idx = jnp.asarray(idx, jnp.int32)
    order = jnp.argsort(idx)
    idx_sorted = idx[order]

    # gather + pad + bf16 cast, all on device (XLA fuses these)
    rbf_p = jnp.pad(jnp.asarray(rbf, jnp.bfloat16)[order],
                    ((0, E_pad - E), (0, 0)))                    # [E_pad, R] bf16
    x_p = jnp.pad(jnp.asarray(x, jnp.bfloat16)[order],
                  ((0, E_pad - E), (0, H_pad - H)))              # [E_pad, H_pad] bf16
    idx_p = jnp.pad(idx_sorted, (0, E_pad - E),
                    constant_values=N_pad).reshape(1, E_pad)     # pad hits no tile row

    # per node-tile contiguous edge range -> covering edge-chunk range
    bounds = jnp.arange(num_node_blocks + 1, dtype=jnp.int32) * TN
    pos = jnp.searchsorted(idx_sorted, bounds, side="left").astype(jnp.int32)
    starts, ends = pos[:-1], pos[1:]
    cs_raw = starts // TE
    ce_raw = jnp.where(ends > starts, (ends + TE - 1) // TE, cs_raw)
    cnt = (ce_raw - cs_raw).astype(jnp.int32)
    cs = jnp.minimum(cs_raw, num_chunks - 1).astype(jnp.int32)

    # Grid extent must be static: pull ONE scalar and bucket it (next pow2)
    # so the number of compiled variants stays O(log(num_chunks)).
    mc = max(int(jnp.max(cnt)), 1)
    max_chunks = min(1 << (mc - 1).bit_length(), num_chunks)

    # ---- pre-transposed, lane-padded, bf16 weight layouts -------------------
    w_rbf_T = jnp.zeros((R, H_pad), jnp.bfloat16).at[:, :H].set(
        jnp.asarray(w_rbf, jnp.float32).T.astype(jnp.bfloat16))
    ws_T = jnp.zeros((L, H_pad, H_pad), jnp.bfloat16).at[:, :H, :H].set(
        jnp.transpose(jnp.asarray(ws, jnp.float32), (0, 2, 1)).astype(jnp.bfloat16))
    bs_p = jnp.zeros((L, 1, H_pad), jnp.float32).at[:, :, :H].set(
        jnp.asarray(bs, jnp.float32))
    w_out_T = jnp.zeros((H_pad, O_pad), jnp.bfloat16).at[:H, :O].set(
        jnp.asarray(w_out, jnp.float32).T.astype(jnp.bfloat16))

    # data-dependent index maps.  Skipped steps (c >= cnt) clamp to this
    # tile's own last valid chunk, so the block index repeats and Pallas
    # issues no DMA for them.
    def edge_map(nb, c, cs_ref, cnt_ref):
        last = cs_ref[nb] + jnp.maximum(cnt_ref[nb] - 1, 0)
        return (jnp.minimum(cs_ref[nb] + c, last), 0)

    def idx_map(nb, c, cs_ref, cnt_ref):
        last = cs_ref[nb] + jnp.maximum(cnt_ref[nb] - 1, 0)
        return (0, jnp.minimum(cs_ref[nb] + c, last))

    const2 = lambda nb, c, cs_ref, cnt_ref: (0, 0)
    const3 = lambda nb, c, cs_ref, cnt_ref: (0, 0, 0)

    grid_spec = pltpu.PrefetchScalarGridSpec(
        num_scalar_prefetch=2,
        grid=(num_node_blocks, max_chunks),
        in_specs=[
            pl.BlockSpec((TE, R), edge_map),           # rbf chunk (bf16)
            pl.BlockSpec((TE, H_pad), edge_map),       # x chunk   (bf16)
            pl.BlockSpec((1, TE), idx_map),            # destination indices
            pl.BlockSpec((R, H_pad), const2),          # W_rbf^T   (resident)
            pl.BlockSpec((L, H_pad, H_pad), const3),   # hidden W^T (resident)
            pl.BlockSpec((L, 1, H_pad), const3),       # hidden biases
            pl.BlockSpec((H_pad, O_pad), const2),      # W_out^T
        ],
        out_specs=pl.BlockSpec((TN, O_pad),
                               lambda nb, c, cs_ref, cnt_ref: (nb, 0)),
        scratch_shapes=[pltpu.VMEM((TN, H_pad), jnp.float32),   # accumulator
                        pltpu.VMEM((TN, TE), jnp.int32)],       # row iota
    )

    out = pl.pallas_call(
        output_block_kernel,
        out_shape=jax.ShapeDtypeStruct((N_pad, O_pad), jnp.float32),
        grid_spec=grid_spec,
        compiler_params=pltpu.CompilerParams(
            dimension_semantics=("parallel", "arbitrary"),
            vmem_limit_bytes=32 * 1024 * 1024),
    )(cs, cnt, rbf_p, x_p, idx_p, w_rbf_T, ws_T, bs_p, w_out_T)

    return out[:num_nodes, :O]


# ---------------- deterministic parameter init (glorot_orthogonal-like) -----
def glorot_orthogonal(key, shape, scale=2.0):
    out_f, in_f = shape
    m = max(out_f, in_f)
    a = jax.random.normal(key, (m, m), dtype=jnp.float32)
    q, _ = jnp.linalg.qr(a)
    w = q[:out_f, :in_f]
    var = jnp.var(w)
    return w * jnp.sqrt(scale / ((in_f + out_f) * var))


def make_params(key, num_radial, hidden, out_channels, num_layers):
    keys = jax.random.split(key, num_layers + 1)
    w_rbf = glorot_orthogonal(keys[0], (hidden, num_radial), scale=2.0)
    ws = jnp.stack([glorot_orthogonal(keys[1 + l], (hidden, hidden), scale=2.0)
                    for l in range(num_layers)])              # [L, H, H]
    bs = jnp.zeros((num_layers, 1, hidden), jnp.float32)      # bias.fill_(0)
    w_out = jnp.zeros((out_channels, hidden), jnp.float32)    # lin.weight.fill_(0)
    return w_rbf, ws, bs, w_out


# ---------------- pure-JAX reference (mirrors kernel numerics) ---------------
def reference_forward(rbf, x, idx, w_rbf, ws, bs, w_out, num_nodes):
    bf = jnp.bfloat16
    g = jnp.dot(rbf.astype(bf), w_rbf.T.astype(bf),
                preferred_element_type=jnp.float32)
    h = (g * x.astype(bf).astype(jnp.float32)).astype(bf).astype(jnp.float32)
    y = jnp.zeros((num_nodes, h.shape[1]), jnp.float32).at[idx].add(h)
    for l in range(ws.shape[0]):
        y = jax.nn.silu(jnp.dot(y.astype(bf), ws[l].T.astype(bf),
                                preferred_element_type=jnp.float32) + bs[l])
    return jnp.dot(y.astype(bf), w_out.T.astype(bf),
                   preferred_element_type=jnp.float32)


if __name__ == "__main__":
    num_radial, hidden, out_channels, num_layers = 8, 32, 16, 2
    num_edges, num_nodes = 16, 8

    key = jax.random.PRNGKey(0)
    k_rbf, k_x, k_i, k_p, k_b, k_o = jax.random.split(key, 6)

    rbf = jax.random.normal(k_rbf, (num_edges, num_radial), jnp.float32)
    x = jax.random.normal(k_x, (num_edges, hidden), jnp.float32)
    idx = jax.random.randint(k_i, (num_edges,), 0, num_nodes, jnp.int32)

    w_rbf, ws, bs, w_out = make_params(k_p, num_radial, hidden,
                                       out_channels, num_layers)
    # reset_parameters zeroes biases and the final weight, which would make
    # the numeric check trivially pass on an all-zero output.  Use non-zero
    # values so the scatter + MLP data path is actually validated.
    bs = 0.1 * jax.random.normal(k_b, bs.shape, jnp.float32)
    w_out = jax.random.normal(k_o, w_out.shape, jnp.float32) / jnp.sqrt(float(hidden))

    out = output_block_forward(rbf, x, idx, w_rbf, ws, bs, w_out, num_nodes)
    out = jax.block_until_ready(out)

    ref = reference_forward(rbf, x, idx, w_rbf, ws, bs, w_out, num_nodes)
    assert out.shape == (num_nodes, out_channels)
    assert jnp.allclose(out, ref, atol=5e-3, rtol=5e-3), "mismatch vs JAX reference"
    print("KERNEL_OK")
</pallas_src>

<mosaic_0001>
module attributes {stable_mosaic.version = 11 : i64} {
  func.func @output_block_kernel(%arg0: i32, %arg1: i32, %arg2: memref<1xi32, #tpu.memory_space<smem>>, %arg3: memref<1xi32, #tpu.memory_space<smem>>, %arg4: memref<128x8xbf16, #tpu.memory_space<vmem>>, %arg5: memref<128x128xbf16, #tpu.memory_space<vmem>>, %arg6: memref<1x128xi32, #tpu.memory_space<vmem>>, %arg7: memref<8x128xbf16, #tpu.memory_space<vmem>>, %arg8: memref<2x128x128xbf16, #tpu.memory_space<vmem>>, %arg9: memref<2x1x128xf32, #tpu.memory_space<vmem>>, %arg10: memref<128x128xbf16, #tpu.memory_space<vmem>>, %arg11: memref<8x128xf32, #tpu.memory_space<vmem>>, %arg12: memref<8x128xf32, #tpu.memory_space<vmem>>, %arg13: memref<8x128xi32, #tpu.memory_space<vmem>>) attributes {dimension_semantics = [#tpu.dimension_semantics<parallel>, #tpu.dimension_semantics<arbitrary>], iteration_bounds = array<i64: 1, 1>, scalar_prefetch = 2 : i64, scratch_operands = 2 : i64, tpu.core_type = #tpu.core_type<tc>, window_params = [{transform_indices = @transform_0, window_bounds = array<i64: 128, 8>}, {transform_indices = @transform_1, window_bounds = array<i64: 128, 128>}, {transform_indices = @transform_2, window_bounds = array<i64: 1, 128>}, {pipeline_mode = #tpu.pipeline_mode<synchronous>, transform_indices = @transform_3, window_bounds = array<i64: 8, 128>}, {pipeline_mode = #tpu.pipeline_mode<synchronous>, transform_indices = @transform_4, window_bounds = array<i64: 2, 128, 128>}, {pipeline_mode = #tpu.pipeline_mode<synchronous>, transform_indices = @transform_5, window_bounds = array<i64: 2, 1, 128>}, {pipeline_mode = #tpu.pipeline_mode<synchronous>, transform_indices = @transform_6, window_bounds = array<i64: 128, 128>}, {transform_indices = @transform_7, window_bounds = array<i64: 8, 128>}]} {
    %0 = arith.index_cast %arg0 : i32 to index
    %1 = memref.load %arg3[%0] : memref<1xi32, #tpu.memory_space<smem>>
    %c0_i32 = arith.constant 0 : i32
    %2 = arith.cmpi eq, %arg1, %c0_i32 : i32
    %3 = arith.extui %2 : i1 to i32
    %c0_i32_0 = arith.constant 0 : i32
    %4 = arith.cmpi ne, %3, %c0_i32_0 : i32
    scf.if %4 {
      %11 = tpu.iota {dimensions = array<i32: 0>} : vector<8x128xi32>
      %c0 = arith.constant 0 : index
      %c0_4 = arith.constant 0 : index
      %12 = vector.load %arg13[%c0, %c0_4] : memref<8x128xi32, #tpu.memory_space<vmem>>, vector<8x128xi32>
      tpu.vector_store %arg13[%c0, %c0_4], %11 {strides = array<i32>} : memref<8x128xi32, #tpu.memory_space<vmem>>, vector<8x128xi32>,
      %c0_i32_5 = arith.constant 0 : i32
      %13 = arith.cmpi eq, %1, %c0_i32_5 : i32
      %14 = arith.extui %13 : i1 to i32
      %c0_i32_6 = arith.constant 0 : i32
      %15 = arith.cmpi ne, %14, %c0_i32_6 : i32
      scf.if %15 {
        %cst = arith.constant 0.000000e+00 : f32
        %16 = vector.broadcast %cst : f32 to vector<8x128xf32>
        %c0_7 = arith.constant 0 : index
        %c0_8 = arith.constant 0 : index
        %17 = vector.load %arg12[%c0_7, %c0_8] : memref<8x128xf32, #tpu.memory_space<vmem>>, vector<8x128xf32>
        tpu.vector_store %arg12[%c0_7, %c0_8], %16 {strides = array<i32>} : memref<8x128xf32, #tpu.memory_space<vmem>>, vector<8x128xf32>,
      } else {
      }
    } else {
    }
    %5 = arith.cmpi slt, %arg1, %1 : i32
    %6 = arith.extui %5 : i1 to i32
    %c0_i32_1 = arith.constant 0 : i32
    %7 = arith.cmpi ne, %6, %c0_i32_1 : i32
    scf.if %7 {
      %c0 = arith.constant 0 : index
      %c0_4 = arith.constant 0 : index
      %11 = vector.load %arg4[%c0, %c0_4] : memref<128x8xbf16, #tpu.memory_space<vmem>>, vector<128x8xbf16>
      %c0_5 = arith.constant 0 : index
      %c0_6 = arith.constant 0 : index
      %12 = vector.load %arg7[%c0_5, %c0_6] : memref<8x128xbf16, #tpu.memory_space<vmem>>, vector<8x128xbf16>
      %cst = arith.constant dense<0.000000e+00> : vector<128x128xf32>
      %13 = tpu.matmul %11, %12, %cst {dimension_numbers = #tpu.dot_dimension_numbers<[1], [0], [0], [1], [0, 0, 1, 1], [], []>} : vector<128x8xbf16>, vector<8x128xbf16>, vector<128x128xf32> -> vector<128x128xf32>
      %c0_7 = arith.constant 0 : index
      %c0_8 = arith.constant 0 : index
      %14 = vector.load %arg5[%c0_7, %c0_8] : memref<128x128xbf16, #tpu.memory_space<vmem>>, vector<128x128xbf16>
      %15 = arith.extf %14 : vector<128x128xbf16> to vector<128x128xf32>
      %16 = arith.mulf %13, %15 : vector<128x128xf32>
      %17 = arith.truncf %16 : vector<128x128xf32> to vector<128x128xbf16>
      %c0_9 = arith.constant 0 : index
      %c0_10 = arith.constant 0 : index
      %18 = vector.load %arg6[%c0_9, %c0_10] : memref<1x128xi32, #tpu.memory_space<vmem>>, vector<1x128xi32>
      %c8_i32 = arith.constant 8 : i32
      %19 = arith.muli %arg0, %c8_i32 : i32
      %20 = vector.broadcast %19 : i32 to vector<1x128xi32>
      %21 = arith.subi %18, %20 : vector<1x128xi32>
      %c0_11 = arith.constant 0 : index
      %c0_12 = arith.constant 0 : index
      %22 = vector.load %arg13[%c0_11, %c0_12] : memref<8x128xi32, #tpu.memory_space<vmem>>, vector<8x128xi32>
      %23 = vector.broadcast %21 : vector<1x128xi32> to vector<8x128xi32>
      %24 = arith.cmpi eq, %23, %22 : vector<8x128xi32>
      %25 = arith.extui %24 : vector<8x128xi1> to vector<8x128xi32>
      %26 = arith.sitofp %25 : vector<8x128xi32> to vector<8x128xf32>
      %27 = arith.truncf %26 : vector<8x128xf32> to vector<8x128xbf16>
      %cst_13 = arith.constant dense<0.000000e+00> : vector<8x128xf32>
      %28 = tpu.matmul %27, %17, %cst_13 {dimension_numbers = #tpu.dot_dimension_numbers<[1], [0], [0], [1], [0, 0, 1, 1], [], []>} : vector<8x128xbf16>, vector<128x128xbf16>, vector<8x128xf32> -> vector<8x128xf32>
      %c0_i32_14 = arith.constant 0 : i32
      %29 = arith.cmpi eq, %arg1, %c0_i32_14 : i32
      %30 = arith.extui %29 : i1 to i32
      %c0_i32_15 = arith.constant 0 : i32
      %31 = arith.cmpi ne, %30, %c0_i32_15 : i32
      scf.if %31 {
        %c0_18 = arith.constant 0 : index
        %c0_19 = arith.constant 0 : index
        %35 = vector.load %arg12[%c0_18, %c0_19] : memref<8x128xf32, #tpu.memory_space<vmem>>, vector<8x128xf32>
        tpu.vector_store %arg12[%c0_18, %c0_19], %28 {strides = array<i32>} : memref<8x128xf32, #tpu.memory_space<vmem>>, vector<8x128xf32>,
      } else {
      }
      %c0_i32_16 = arith.constant 0 : i32
      %32 = arith.cmpi sgt, %arg1, %c0_i32_16 : i32
      %33 = arith.extui %32 : i1 to i32
      %c0_i32_17 = arith.constant 0 : i32
      %34 = arith.cmpi ne, %33, %c0_i32_17 : i32
      scf.if %34 {
        %c0_18 = arith.constant 0 : index
        %c0_19 = arith.constant 0 : index
        %35 = vector.load %arg12[%c0_18, %c0_19] : memref<8x128xf32, #tpu.memory_space<vmem>>, vector<8x128xf32>
        %36 = arith.addf %35, %28 : vector<8x128xf32>
        %c0_20 = arith.constant 0 : index
        %c0_21 = arith.constant 0 : index
        %37 = vector.load %arg12[%c0_20, %c0_21] : memref<8x128xf32, #tpu.memory_space<vmem>>, vector<8x128xf32>
        tpu.vector_store %arg12[%c0_20, %c0_21], %36 {strides = array<i32>} : memref<8x128xf32, #tpu.memory_space<vmem>>, vector<8x128xf32>,
      } else {
      }
    } else {
    }
    %c0_i32_2 = arith.constant 0 : i32
    %8 = arith.cmpi eq, %arg1, %c0_i32_2 : i32
    %9 = arith.extui %8 : i1 to i32
    %c0_i32_3 = arith.constant 0 : i32
    %10 = arith.cmpi ne, %9, %c0_i32_3 : i32
    scf.if %10 {
      %c0 = arith.constant 0 : index
      %c0_4 = arith.constant 0 : index
      %11 = vector.load %arg12[%c0, %c0_4] : memref<8x128xf32, #tpu.memory_space<vmem>>, vector<8x128xf32>
      %12 = arith.truncf %11 : vector<8x128xf32> to vector<8x128xbf16>
      %c0_5 = arith.constant 0 : index
      %c0_6 = arith.constant 0 : index
      %c0_7 = arith.constant 0 : index
      %13 = vector.load %arg8[%c0_5, %c0_6, %c0_7] : memref<2x128x128xbf16, #tpu.memory_space<vmem>>, vector<1x128x128xbf16>
      %14 = vector.shape_cast %13 : vector<1x128x128xbf16> to vector<128x128xbf16>
      %cst = arith.constant dense<0.000000e+00> : vector<8x128xf32>
      %15 = tpu.matmul %12, %14, %cst {dimension_numbers = #tpu.dot_dimension_numbers<[1], [0], [0], [1], [0, 0, 1, 1], [], []>} : vector<8x128xbf16>, vector<128x128xbf16>, vector<8x128xf32> -> vector<8x128xf32>
      %c0_8 = arith.constant 0 : index
      %c0_9 = arith.constant 0 : index
      %c0_10 = arith.constant 0 : index
      %16 = vector.load %arg9[%c0_8, %c0_9, %c0_10] : memref<2x1x128xf32, #tpu.memory_space<vmem>>, vector<1x1x128xf32>
      %17 = vector.shape_cast %16 : vector<1x1x128xf32> to vector<1x128xf32>
      %18 = vector.broadcast %17 : vector<1x128xf32> to vector<8x128xf32>
      %19 = arith.addf %15, %18 : vector<8x128xf32>
      %20 = arith.negf %19 : vector<8x128xf32>
      %21 = math.exp %20 : vector<8x128xf32>
      %cst_11 = arith.constant 1.000000e+00 : f32
      %22 = vector.broadcast %cst_11 : f32 to vector<8x128xf32>
      %23 = arith.addf %22, %21 : vector<8x128xf32>
      %24 = arith.divf %22, %23 : vector<8x128xf32>
      %25 = arith.mulf %19, %24 : vector<8x128xf32>
      %26 = arith.truncf %25 : vector<8x128xf32> to vector<8x128xbf16>
      %c1 = arith.constant 1 : index
      %c0_12 = arith.constant 0 : index
      %c0_13 = arith.constant 0 : index
      %27 = vector.load %arg8[%c1, %c0_12, %c0_13] : memref<2x128x128xbf16, #tpu.memory_space<vmem>>, vector<1x128x128xbf16>
      %28 = vector.shape_cast %27 : vector<1x128x128xbf16> to vector<128x128xbf16>
      %cst_14 = arith.constant dense<0.000000e+00> : vector<8x128xf32>
      %29 = tpu.matmul %26, %28, %cst_14 {dimension_numbers = #tpu.dot_dimension_numbers<[1], [0], [0], [1], [0, 0, 1, 1], [], []>} : vector<8x128xbf16>, vector<128x128xbf16>, vector<8x128xf32> -> vector<8x128xf32>
      %c1_15 = arith.constant 1 : index
      %c0_16 = arith.constant 0 : index
      %c0_17 = arith.constant 0 : index
      %30 = vector.load %arg9[%c1_15, %c0_16, %c0_17] : memref<2x1x128xf32, #tpu.memory_space<vmem>>, vector<1x1x128xf32>
      %31 = vector.shape_cast %30 : vector<1x1x128xf32> to vector<1x128xf32>
      %32 = vector.broadcast %31 : vector<1x128xf32> to vector<8x128xf32>
      %33 = arith.addf %29, %32 : vector<8x128xf32>
      %34 = arith.negf %33 : vector<8x128xf32>
      %35 = math.exp %34 : vector<8x128xf32>
      %cst_18 = arith.constant 1.000000e+00 : f32
      %36 = vector.broadcast %cst_18 : f32 to vector<8x128xf32>
      %37 = arith.addf %36, %35 : vector<8x128xf32>
      %38 = arith.divf %36, %37 : vector<8x128xf32>
      %39 = arith.mulf %33, %38 : vector<8x128xf32>
      %40 = arith.truncf %39 : vector<8x128xf32> to vector<8x128xbf16>
      %c0_19 = arith.constant 0 : index
      %c0_20 = arith.constant 0 : index
      %41 = vector.load %arg10[%c0_19, %c0_20] : memref<128x128xbf16, #tpu.memory_space<vmem>>, vector<128x128xbf16>
      %cst_21 = arith.constant dense<0.000000e+00> : vector<8x128xf32>
      %42 = tpu.matmul %40, %41, %cst_21 {dimension_numbers = #tpu.dot_dimension_numbers<[1], [0], [0], [1], [0, 0, 1, 1], [], []>} : vector<8x128xbf16>, vector<128x128xbf16>, vector<8x128xf32> -> vector<8x128xf32>
      %c0_22 = arith.constant 0 : index
      %c0_23 = arith.constant 0 : index
      %43 = vector.load %arg11[%c0_22, %c0_23] : memref<8x128xf32, #tpu.memory_space<vmem>>, vector<8x128xf32>
      tpu.vector_store %arg11[%c0_22, %c0_23], %42 {strides = array<i32>} : memref<8x128xf32, #tpu.memory_space<vmem>>, vector<8x128xf32>,
    } else {
    }
    return
  }
  func.func @transform_0(%arg0: i32, %arg1: i32, %arg2: memref<1xi32, #tpu.memory_space<smem>>, %arg3: memref<1xi32, #tpu.memory_space<smem>>) -> (i32, i32) {
    %0 = arith.index_cast %arg0 : i32 to index
    %1 = memref.load %arg2[%0] : memref<1xi32, #tpu.memory_space<smem>>
    %2 = arith.index_cast %arg0 : i32 to index
    %3 = memref.load %arg3[%2] : memref<1xi32, #tpu.memory_space<smem>>
    %c1_i32 = arith.constant 1 : i32
    %4 = arith.subi %3, %c1_i32 : i32
    %c0_i32 = arith.constant 0 : i32
    %5 = arith.maxsi %4, %c0_i32 : i32
    %6 = arith.addi %1, %5 : i32
    %7 = arith.index_cast %arg0 : i32 to index
    %8 = memref.load %arg2[%7] : memref<1xi32, #tpu.memory_space<smem>>
    %9 = arith.addi %8, %arg1 : i32
    %10 = arith.minsi %9, %6 : i32
    %c0_i32_0 = arith.constant 0 : i32
    %c0_i32_1 = arith.constant 0 : i32
    return %10, %c0_i32_0 : i32, i32
  }
  func.func @transform_1(%arg0: i32, %arg1: i32, %arg2: memref<1xi32, #tpu.memory_space<smem>>, %arg3: memref<1xi32, #tpu.memory_space<smem>>) -> (i32, i32) {
    %0 = arith.index_cast %arg0 : i32 to index
    %1 = memref.load %arg2[%0] : memref<1xi32, #tpu.memory_space<smem>>
    %2 = arith.index_cast %arg0 : i32 to index
    %3 = memref.load %arg3[%2] : memref<1xi32, #tpu.memory_space<smem>>
    %c1_i32 = arith.constant 1 : i32
    %4 = arith.subi %3, %c1_i32 : i32
    %c0_i32 = arith.constant 0 : i32
    %5 = arith.maxsi %4, %c0_i32 : i32
    %6 = arith.addi %1, %5 : i32
    %7 = arith.index_cast %arg0 : i32 to index
    %8 = memref.load %arg2[%7] : memref<1xi32, #tpu.memory_space<smem>>
    %9 = arith.addi %8, %arg1 : i32
    %10 = arith.minsi %9, %6 : i32
    %c0_i32_0 = arith.constant 0 : i32
    %c0_i32_1 = arith.constant 0 : i32
    return %10, %c0_i32_0 : i32, i32
  }
  func.func @transform_2(%arg0: i32, %arg1: i32, %arg2: memref<1xi32, #tpu.memory_space<smem>>, %arg3: memref<1xi32, #tpu.memory_space<smem>>) -> (i32, i32) {
    %0 = arith.index_cast %arg0 : i32 to index
    %1 = memref.load %arg2[%0] : memref<1xi32, #tpu.memory_space<smem>>
    %2 = arith.index_cast %arg0 : i32 to index
    %3 = memref.load %arg3[%2] : memref<1xi32, #tpu.memory_space<smem>>
    %c1_i32 = arith.constant 1 : i32
    %4 = arith.subi %3, %c1_i32 : i32
    %c0_i32 = arith.constant 0 : i32
    %5 = arith.maxsi %4, %c0_i32 : i32
    %6 = arith.addi %1, %5 : i32
    %7 = arith.index_cast %arg0 : i32 to index
    %8 = memref.load %arg2[%7] : memref<1xi32, #tpu.memory_space<smem>>
    %9 = arith.addi %8, %arg1 : i32
    %10 = arith.minsi %9, %6 : i32
    %c0_i32_0 = arith.constant 0 : i32
    %c0_i32_1 = arith.constant 0 : i32
    return %c0_i32_0, %10 : i32, i32
  }
  func.func @transform_3(%arg0: i32, %arg1: i32, %arg2: memref<1xi32, #tpu.memory_space<smem>>, %arg3: memref<1xi32, #tpu.memory_space<smem>>) -> (i32, i32) {
    %c0_i32 = arith.constant 0 : i32
    %c0_i32_0 = arith.constant 0 : i32
    %c0_i32_1 = arith.constant 0 : i32
    return %c0_i32, %c0_i32_0 : i32, i32
  }
  func.func @transform_4(%arg0: i32, %arg1: i32, %arg2: memref<1xi32, #tpu.memory_space<smem>>, %arg3: memref<1xi32, #tpu.memory_space<smem>>) -> (i32, i32, i32) {
    %c0_i32 = arith.constant 0 : i32
    %c0_i32_0 = arith.constant 0 : i32
    %c0_i32_1 = arith.constant 0 : i32
    %c0_i32_2 = arith.constant 0 : i32
    return %c0_i32, %c0_i32_0, %c0_i32_1 : i32, i32, i32
  }
  func.func @transform_5(%arg0: i32, %arg1: i32, %arg2: memref<1xi32, #tpu.memory_space<smem>>, %arg3: memref<1xi32, #tpu.memory_space<smem>>) -> (i32, i32, i32) {
    %c0_i32 = arith.constant 0 : i32
    %c0_i32_0 = arith.constant 0 : i32
    %c0_i32_1 = arith.constant 0 : i32
    %c0_i32_2 = arith.constant 0 : i32
    return %c0_i32, %c0_i32_0, %c0_i32_1 : i32, i32, i32
  }
  func.func @transform_6(%arg0: i32, %arg1: i32, %arg2: memref<1xi32, #tpu.memory_space<smem>>, %arg3: memref<1xi32, #tpu.memory_space<smem>>) -> (i32, i32) {
    %c0_i32 = arith.constant 0 : i32
    %c0_i32_0 = arith.constant 0 : i32
    %c0_i32_1 = arith.constant 0 : i32
    return %c0_i32, %c0_i32_0 : i32, i32
  }
  func.func @transform_7(%arg0: i32, %arg1: i32, %arg2: memref<1xi32, #tpu.memory_space<smem>>, %arg3: memref<1xi32, #tpu.memory_space<smem>>) -> (i32, i32) {
    %c0_i32 = arith.constant 0 : i32
    %c0_i32_0 = arith.constant 0 : i32
    return %arg0, %c0_i32 : i32, i32
  }
}

</mosaic_0001>

<bundles_post_ra>
// kernel: tpu_custom_call.1
= control target key start
LH: loop header
LB: loop body
LE: loop exit
PB: predicated region body
PF: predicated region fallthrough
CT: control target
= control target key end

     0   :  { %16 = vsyncpa [#allocation8], 0  ;;  %s1502_s0 = inlined_call_operand.<no memory space> [shape: s32[1], index: 0, kind: input, shape index: {}]   ;;  %s1503_s1 = inlined_call_operand.<no memory space> [shape: s32[1], index: 1, kind: input, shape index: {}]   ;;  %s1504_s2 = inlined_call_operand.vmem [shape: bf16[128,8], index: 2, kind: input, shape index: {}]   ;;  %s1505_s3 = inlined_call_operand.vmem [shape: bf16[128,128], index: 3, kind: input, shape index: {}]   ;;  %s1506_s4 = inlined_call_operand.vmem [shape: s32[1,128], index: 4, kind: input, shape index: {}]   ;;  %s1507_s5 = inlined_call_operand.vmem [shape: bf16[8,128], index: 5, kind: input, shape index: {}]   ;;  %s1508_s6 = inlined_call_operand.hbm [shape: bf16[2,128,128], index: 6, kind: input, shape index: {}]   ;;  %s1509_s7 = inlined_call_operand.vmem [shape: f32[2,1,128], index: 7, kind: input, shape index: {}]   ;;  %s1510_s8 = inlined_call_operand.hbm [shape: bf16[128,128], index: 8, kind: input, shape index: {}]   ;;  %s1511_s9 = inlined_call_operand.hbm [shape: f32[8,128], index: 9, kind: output, shape index: {}]  }
   0x1   :  { %17 = vsyncpa [#allocation11], 0 }
   0x2   :  { %18 = vsyncpa [#allocation9], 0  ;;  %s1304_s30 = smov [#allocation7]   ;;  %s1232_s13 = scalar_lea.hbm %s1508_s6, 2048 }
   0x3   :  { %s101_s10 = sshll.u32 %s1304_s30, 4  ;;  %p1233_p0 = scmp.ne.s32.totalorder %s1508_s6, %s1232_s13  ;;  %s102_s10 = int_to_ptr.vmem [resolvable:$true] %s101_s10 }
   0x4   :  { %p1236_p1 = scmp.lt.u32.totalorder %s1232_s13, %s1508_s6 }
   0x6   :  { %p1238_p2 = pnand %p1236_p1, %p1233_p0 }
   0x8   :  { %1241 = shalt.err (!%p1238_p2)
}
   0x9   :  { %s1242_s18 = scalar_lea.vmem %s102_s10, 2048  ;;  %p1247_p4 = scmp.lt.s32.totalorder %s102_s10, %s102_s10 }
   0xa   :  { %p1243_p3 = scmp.ne.s32.totalorder %s102_s10, %s1242_s18  ;;  %p1248_p5 = scmp.lt.s32.totalorder %s1242_s18, %s1242_s18 }
   0xc   :  { %p1249_p6 = por %p1248_p5, %p1247_p4 }
   0xe   :  { %p1250_p7 = pnand %p1249_p6, %p1243_p3 }
  0x10   :  { %1253 = shalt.err (!%p1250_p7)
}
  0x11   :  { %s1305_s19 = smov 64   ;;  %s1306_s20 = smov 4  }
  0x12   :  { %107 = dma.hbm_to_vmem [thread:$0]  %s1508_s6, 2048, %s102_s10, [#allocation8], %s1305_s19, %s1305_s19, %s1306_s20  }
  0x13   :  { %s1307_s23 = smov [#allocation10]   ;;  %s1254_s27 = scalar_lea.hbm %s1510_s8, 1024 }
  0x14   :  { %s115_s24 = sshll.u32 %s1307_s23, 4  ;;  %p1255_p8 = scmp.ne.s32.totalorder %s1510_s8, %s1254_s27  ;;  %s116_s24 = int_to_ptr.vmem [resolvable:$true] %s115_s24 }
  0x15   :  { %p1258_p9 = scmp.lt.u32.totalorder %s1254_s27, %s1510_s8 }
  0x17   :  { %p1260_p10 = pnand %p1258_p9, %p1255_p8 }
  0x19   :  { %1263 = shalt.err (!%p1260_p10)
}
  0x1a   :  { %s1264_s12 = scalar_lea.vmem %s116_s24, 1024  ;;  %p1269_p12 = scmp.lt.s32.totalorder %s116_s24, %s116_s24 }
  0x1b   :  { %p1265_p11 = scmp.ne.s32.totalorder %s116_s24, %s1264_s12  ;;  %p1270_p13 = scmp.lt.s32.totalorder %s1264_s12, %s1264_s12 }
  0x1d   :  { %p1271_p0 = por %p1270_p13, %p1269_p12 }
  0x1f   :  { %p1272_p1 = pnand %p1271_p0, %p1265_p11 }
  0x21   :  { %1275 = shalt.err (!%p1272_p1)
}
  0x22   :  { %121 = dma.hbm_to_vmem [thread:$0]  %s1510_s8, 1024, %s116_s24, [#allocation11], %s1305_s19, %s1305_s19, %s1306_s20  }
  0x23   :  { %1298 = dma.done.wait [#allocation8], 2048  }
  0x24   :  { %1299 = vsyncadd [#allocation8], 4294965248 }
  0x25   :  { %1300 = dma.done.wait [#allocation11], 1024  }
  0x26   :  { %1301 = vsyncadd [#allocation11], 4294966272  ;;  %s939_s15 = sadd.s32 4294967295, %s1503_s1  ;;  %v243_v0 = vlaneseq  ;;  %p946_p6 = scmp.ne.s32.totalorder %s1503_s1, 0 }
  0x27   :  { %p171_p2 = scmp.gt.s32.totalorder %s939_s15, 0  ;;  %v1308_v2 = vmov (!%p946_p6), 0.0  }
  0x28   :  { %v244_v1 = vshrl.u32 %v243_v0, 7  ;;  %250 = vst [vmem:[#allocation2] sm:$0xff] (!%p946_p6), %v1308_v2 }
  0x29   :  { %s1513_s15 = smov (!%p171_p2, %s939_s15), 0 }
  0x2a   :  { %245 = vst [vmem:[#allocation3] sm:$0xff] %v244_v1  ;;  %s173_s18 = sadd.s32 %s1513_s15, %s1502_s0 }
  0x2b   :  { %p175_p3 = scmp.lt.s32.totalorder %s1502_s0, %s173_s18 }
  0x2d   :  { %s1515_s0 = smov (!%p175_p3, %s1502_s0), %s173_s18  ;;  %249 = sbr.rel (%p946_p6) target bundleno = 52 (0x34), region = 45 }
  0x2e   :  { %s940_s20 = sshll.u32 %s1515_s0, 4  ;;  %p225_p4 = scmp.lt.s32.totalorder %s1515_s0, 0 }
  0x2f   :  { %p178_p5 = scmp.lt.s32.totalorder %s940_s20, 15 }
  0x30   :  { %s1517_s0 = smov (!%p225_p4, %s1515_s0), 0 }
  0x31   :  { %s1519_s20 = smov (!%p178_p5, %s940_s20), 15  ;;  %s227_s25 = scalar_lea.vmem %s1506_s4, %s1517_s0 }
  0x32   :  { %s941_s26 = sshll.u32 %s1519_s20, 2 }
  0x33   :  { %s181_s29 = scalar_lea.vmem %s1504_s2, %s941_s26  ;;  %s1413_s12 = scalar_lea.vmem %s1505_s3, %s941_s26 }
  0x34 PF:  { %p948_p7 = scmp.le.s32.totalorder %s1503_s1, 0 }
  0x35   :  { %v271_v3 = vld [vmem:[%s1507_s5] sm:$0xf] (!%p948_p7)  ;;  %vm337_vm0 = vcmask (!%p948_p7), 1043456   ;;  %vm312_vm1 = vcmask (!%p948_p7), 64512   ;;  %v1193_v6 = vld [vmem:[%s181_s29 + $0x8] sm:$0xff] (!%p948_p7)   ;;  %v1194_v7 = vld [vmem:[%s181_s29 + $0x10] sm:$0xff] (!%p948_p7)  }
  0x36   :  { %254 = sbr.rel (%p948_p7) target bundleno = 523 (0x20b), region = 49  ;;  %v1192_v4 = vld [vmem:[%s181_s29] sm:$0xff] (!%p948_p7)   ;;  %1180 = vmatprep.subr.msk.bf16.mxu0 (!%p948_p7), %vm337_vm0, %v271_v3  ;;  %v339_v5 = vsel (!%p948_p7), %vm337_vm0, %v271_v3, 0  ;;  %v1195_v8 = vld [vmem:[%s181_s29 + $0x18] sm:$0xff] (!%p948_p7)   ;;  %v1197_v10 = vld [vmem:[%s181_s29 + $0x28] sm:$0xff] (!%p948_p7)   ;;  %v1309_v13 = vmov (!%p948_p7), 0.0  }
  0x37   :  { %1083 = vmatpush3.bf16.msra.mxu0 (!%p948_p7), %v339_v5  ;;  %1084 = vmatprep.mubr.msk.bf16.mxu0 (!%p948_p7), %vm312_vm1, %v1192_v4  ;;  %v1196_v9 = vld [vmem:[%s181_s29 + $0x20] sm:$0xff] (!%p948_p7)   ;;  %v1198_v11 = vld [vmem:[%s181_s29 + $0x30] sm:$0xff] (!%p948_p7)   ;;  %v1199_v12 = vld [vmem:[%s181_s29 + $0x38] sm:$0xff] (!%p948_p7)   ;;  %vm1310_vm2 = vmmov (!%p948_p7), 0  }
  0x38   :  { %1100 = vmatprep.subr.bf16.mxu1 (!%p948_p7), %v1309_v13  ;;  %1116 = vmatprep.mubr.msk.bf16.mxu1 (!%p948_p7), %vm1310_vm2, %v1309_v13  ;;  %v1030_v14 = vld [vmem:[%s1413_s12 + $0x8] sm:$0xff] (!%p948_p7)   ;;  %v999_v15 = vld [vmem:[%s1413_s12] sm:$0xff] (!%p948_p7)   ;;  %v1032_v28 = vld [vmem:[%s1413_s12 + $0x18] sm:$0xff] (!%p948_p7)  }
  0x39   :  { %v1004_v16 = vunpack.c.l.bf16 (!%p948_p7), %v1030_v14  ;;  %v1005_v17 = vunpack.c.h.bf16 (!%p948_p7), %v1030_v14  ;;  %v1000_v19 = vunpack.c.l.bf16 (!%p948_p7), %v999_v15  ;;  %v1001_v20 = vunpack.c.h.bf16 (!%p948_p7), %v999_v15  ;;  %v1031_v30 = vld [vmem:[%s1413_s12 + $0x10] sm:$0xff] (!%p948_p7)   ;;  %v1034_v44 = vld [vmem:[%s1413_s12 + $0x28] sm:$0xff] (!%p948_p7)   ;;  %v1033_v46 = vld [vmem:[%s1413_s12 + $0x20] sm:$0xff] (!%p948_p7)  }
  0x3a   :  { %1085 = vmatmul.mubr.msk.bf16.vlgmr.msra.gmra.mrb[0].mxu0 (!%p948_p7), %vm312_vm1, %v1193_v6  ;;  %v1012_v32 = vunpack.c.l.bf16 (!%p948_p7), %v1032_v28  ;;  %v1013_v33 = vunpack.c.h.bf16 (!%p948_p7), %v1032_v28  ;;  %v1008_v35 = vunpack.c.l.bf16 (!%p948_p7), %v1031_v30  ;;  %v1009_v36 = vunpack.c.h.bf16 (!%p948_p7), %v1031_v30  ;;  %v1036_v60 = vld [vmem:[%s1413_s12 + $0x38] sm:$0xff] (!%p948_p7)   ;;  %v1035_v62 = vld [vmem:[%s1413_s12 + $0x30] sm:$0xff] (!%p948_p7)   ;;  %v965_v15 = vld [vmem:[%s227_s25] ss:$0 sm:$0xff] (!%p948_p7) }
  0x3b   :  { %1088 = vmatprep.mubr.msk.bf16.mxu0 (!%p948_p7), %vm312_vm1, %v1194_v7  ;;  %v1020_v48 = vunpack.c.l.bf16 (!%p948_p7), %v1034_v44  ;;  %v1021_v49 = vunpack.c.h.bf16 (!%p948_p7), %v1034_v44  ;;  %v1016_v51 = vunpack.c.l.bf16 (!%p948_p7), %v1033_v46  ;;  %v1017_v52 = vunpack.c.h.bf16 (!%p948_p7), %v1033_v46 }
  0x3c   :  { %v1028_v0 = vunpack.c.l.bf16 (!%p948_p7), %v1036_v60  ;;  %v1029_v1 = vunpack.c.h.bf16 (!%p948_p7), %v1036_v60  ;;  %v1024_v3 = vunpack.c.l.bf16 (!%p948_p7), %v1035_v62  ;;  %v1025_v4 = vunpack.c.h.bf16 (!%p948_p7), %v1035_v62 }
  0x42   :  { %1089 = vmatmul.mubr.msk.bf16.gmra.mrb[4].mxu0 %vm312_vm1, %v1195_v8 }
  0x43   :  { %1092 = vmatprep.mubr.msk.bf16.mxu0 %vm312_vm1, %v1196_v9 }
  0x4a   :  { %1093 = vmatmul.mubr.msk.bf16.gmra.mrb[8].mxu0 %vm312_vm1, %v1197_v10 }
  0x4b   :  { %1096 = vmatprep.mubr.msk.bf16.mxu0 %vm312_vm1, %v1198_v11 }
  0x52   :  { %1097 = vmatmul.mubr.msk.bf16.gmra.mrb[12].mxu0 %vm312_vm1, %v1199_v12 }
 0x10d   :  { %v1086_v18 = vpop.f32.mrb[0].mxu0 }
 0x10e   :  { %v375_v21 = vpop.f32.mrb[1].mxu0  ;;  %v472_v23 = vmul.f32 %v1086_v18, %v1004_v16  ;;  %v498_v16 = vld [vmem:[#allocation3] sm:$0xff] }
 0x10f   :  { %v1087_v22 = vpop.f32.mrb[2].mxu0  ;;  %v470_v26 = vmul.f32 %v1000_v19, %v375_v21  ;;  %vm503_vm3 = vcmp.eq.s32.totalorder %v965_v15, %v498_v16 }
 0x110   :  { %v473_v24 = vmul.f32 %v1087_v22, %v1005_v17  ;;  %v378_v25 = vpop.f32.mrb[3].mxu0  ;;  %vm967_vm4 = vmpackc.low %vm503_vm3, %vm503_vm3  ;;  %v1311_v17 = vmov 1.0|1.0  }
 0x111   :  { %v471_v27 = vmul.f32 %v1001_v20, %v378_v25 }
 0x112   :  { %v487_v29 = vpack.c.bf16 %v473_v24, %v472_v23 }
 0x113   :  { %v486_v31 = vpack.c.bf16 %v471_v27, %v470_v26 }
 0x115   :  { %v1090_v34 = vpop.f32.mrb[4].mxu0  ;;  %1101 = vmatpush3.bf16.msra.mxu1 %v486_v31 }
 0x116   :  { %v391_v37 = vpop.f32.mrb[5].mxu0  ;;  %1102 = vmatprep.subr.bf16.mxu1 %v1309_v13  ;;  %v476_v39 = vmul.f32 %v1090_v34, %v1012_v32 }
 0x117   :  { %v1091_v38 = vpop.f32.mrb[6].mxu0  ;;  %v474_v42 = vmul.f32 %v1008_v35, %v391_v37 }
 0x118   :  { %v477_v40 = vmul.f32 %v1091_v38, %v1013_v33  ;;  %v394_v41 = vpop.f32.mrb[7].mxu0 }
 0x119   :  { %v475_v43 = vmul.f32 %v1009_v36, %v394_v41  ;;  %1103 = vmatpush3.bf16.msra.mxu1 %v487_v29 }
 0x11a   :  { %v489_v45 = vpack.c.bf16 %v477_v40, %v476_v39  ;;  %1104 = vmatprep.subr.bf16.mxu1 %v1309_v13 }
 0x11b   :  { %v488_v47 = vpack.c.bf16 %v475_v43, %v474_v42 }
 0x11d   :  { %v1094_v50 = vpop.f32.mrb[8].mxu0  ;;  %1105 = vmatpush3.bf16.msra.mxu1 %v488_v47 }
 0x11e   :  { %v407_v53 = vpop.f32.mrb[9].mxu0  ;;  %1106 = vmatprep.subr.bf16.mxu1 %v1309_v13  ;;  %v480_v55 = vmul.f32 %v1094_v50, %v1020_v48 }
 0x11f   :  { %v1095_v54 = vpop.f32.mrb[10].mxu0  ;;  %v478_v58 = vmul.f32 %v1016_v51, %v407_v53 }
 0x120   :  { %v481_v56 = vmul.f32 %v1095_v54, %v1021_v49  ;;  %v410_v57 = vpop.f32.mrb[11].mxu0 }
 0x121   :  { %v479_v59 = vmul.f32 %v1017_v52, %v410_v57  ;;  %1107 = vmatpush3.bf16.msra.mxu1 %v489_v45 }
 0x122   :  { %v491_v61 = vpack.c.bf16 %v481_v56, %v480_v55  ;;  %1108 = vmatprep.subr.bf16.mxu1 %v1309_v13 }
 0x123   :  { %v490_v63 = vpack.c.bf16 %v479_v59, %v478_v58 }
 0x125   :  { %v1098_v2 = vpop.f32.mrb[12].mxu0  ;;  %1109 = vmatpush3.bf16.msra.mxu1 %v490_v63 }
 0x126   :  { %v423_v5 = vpop.f32.mrb[13].mxu0  ;;  %1110 = vmatprep.subr.bf16.mxu1 %v1309_v13  ;;  %v484_v7 = vmul.f32 %v1098_v2, %v1028_v0 }
 0x127   :  { %v1099_v6 = vpop.f32.mrb[14].mxu0  ;;  %v482_v10 = vmul.f32 %v1024_v3, %v423_v5 }
 0x128   :  { %v485_v8 = vmul.f32 %v1099_v6, %v1029_v1  ;;  %v426_v9 = vpop.f32.mrb[15].mxu0 }
 0x129   :  { %v483_v11 = vmul.f32 %v1025_v4, %v426_v9  ;;  %1111 = vmatpush3.bf16.msra.mxu1 %v491_v61 }
 0x12a   :  { %v493_v12 = vpack.c.bf16 %v485_v8, %v484_v7  ;;  %1112 = vmatprep.subr.bf16.mxu1 %v1309_v13 }
 0x12b   :  { %v492_v14 = vpack.c.bf16 %v483_v11, %v482_v10 }
 0x12d   :  { %1113 = vmatpush3.bf16.msra.mxu1 %v492_v14 }
 0x12e   :  { %1114 = vmatprep.subr.bf16.mxu1 %v1309_v13 }
 0x131   :  { %1115 = vmatpush3.bf16.msra.mxu1 %v493_v12 }
 0x134   :  { %1117 = vmatmul.mubr.msk.bf16.vlgmr.msra.gmra.mrb[0].mxu1 %vm967_vm4, %v1311_v17 }
 0x207   :  { %v541_v18 = vpop.f32.mrb[0].mxu1 }
 0x208   :  { %550 = vst [vmem:[#allocation2] sm:$0xff] %v541_v18  ;;  %v1118_v19 = vpop.f32.mrb[1].mxu1 }
 0x209   :  { %v544_v20 = vpop.f32.mrb[2].mxu1 }
 0x20a   :  { %v1119_v21 = vpop.f32.mrb[3].mxu1 }
 0x20b PF:  { %v1200_v22 = vld [vmem:[#allocation7] sm:$0xff]   ;;  %v1312_v23 = vmov 0.0   ;;  %v1201_v24 = vld [vmem:[#allocation7 + $0x8] sm:$0xff]   ;;  %vm1313_vm5 = vmmov 0   ;;  %v1202_v13 = vld [vmem:[#allocation7 + $0x10] sm:$0xff]   ;;  %s1314_s17 = smov [#allocation12]  }
 0x20c   :  { %1120 = vmatprep.subr.bf16.mxu0 %v1312_v23  ;;  %1140 = vmatprep.subr.bf16.mxu1 %v1312_v23  ;;  %v1203_v25 = vld [vmem:[#allocation7 + $0x18] sm:$0xff]   ;;  %v1204_v26 = vld [vmem:[#allocation7 + $0x20] sm:$0xff]   ;;  %v1205_v27 = vld [vmem:[#allocation7 + $0x28] sm:$0xff]   ;;  %s914_s18 = sshll.u32 %s1314_s17, 4  ;;  %s915_s18 = int_to_ptr.vmem [resolvable:$true] %s914_s18 }
 0x20d   :  { %1121 = vmatpush3.bf16.msra.mxu0 %v1200_v22  ;;  %1136 = vmatprep.mubr.msk.bf16.mxu0 %vm1313_vm5, %v1312_v23  ;;  %v1206_v28 = vld [vmem:[#allocation7 + $0x30] sm:$0xff]   ;;  %v1207_v29 = vld [vmem:[#allocation7 + $0x38] sm:$0xff]   ;;  %v1208_v32 = vld [vmem:[#allocation7 + $0x40] sm:$0xff]   ;;  %p1281_p9 = scmp.lt.s32.totalorder %s915_s18, %s915_s18 }
 0x20e   :  { %1122 = vmatprep.subr.bf16.mxu0 %v1312_v23  ;;  %1156 = vmatprep.mubr.msk.bf16.mxu1 %vm1313_vm5, %v1312_v23  ;;  %v1209_v33 = vld [vmem:[#allocation7 + $0x48] sm:$0xff]   ;;  %v1210_v34 = vld [vmem:[#allocation7 + $0x50] sm:$0xff]   ;;  %v1211_v35 = vld [vmem:[#allocation7 + $0x58] sm:$0xff]  }
 0x20f   :  { %v561_v30 = vld [vmem:[#allocation2] sm:$0xff]  ;;  %1141 = vmatpush3.bf16.msra.mxu1 %v1208_v32  ;;  %v1212_v36 = vld [vmem:[#allocation7 + $0x60] sm:$0xff]   ;;  %v1213_v37 = vld [vmem:[#allocation7 + $0x68] sm:$0xff]  }
 0x210   :  { %v562_v31 = vpack.c.bf16 %v561_v30, %v561_v30  ;;  %1142 = vmatprep.subr.bf16.mxu1 %v1312_v23  ;;  %v1214_v38 = vld [vmem:[#allocation7 + $0x70] sm:$0xff]   ;;  %v1215_v39 = vld [vmem:[#allocation7 + $0x78] sm:$0xff]   ;;  %v1216_v52 = vld [vmem:[#allocation10] sm:$0xff]  }
 0x211   :  { %1123 = vmatpush3.bf16.msra.mxu0 %v1201_v24  ;;  %v969_v40 = vld [vmem:[%s1509_s7] ss:$0 sm:$0xff]  ;;  %v1217_v53 = vld [vmem:[#allocation10 + $0x8] sm:$0xff]   ;;  %v1219_v55 = vld [vmem:[#allocation10 + $0x18] sm:$0xff]  }
 0x212   :  { %1124 = vmatprep.subr.bf16.mxu0 %v1312_v23  ;;  %v1218_v54 = vld [vmem:[#allocation10 + $0x10] sm:$0xff]   ;;  %v1220_v56 = vld [vmem:[#allocation10 + $0x20] sm:$0xff]   ;;  %v1221_v57 = vld [vmem:[#allocation10 + $0x28] sm:$0xff]  }
 0x213   :  { %1143 = vmatpush3.bf16.msra.mxu1 %v1209_v33  ;;  %v1222_v58 = vld [vmem:[#allocation10 + $0x30] sm:$0xff]   ;;  %v1223_v59 = vld [vmem:[#allocation10 + $0x38] sm:$0xff]  }
 0x214   :  { %1144 = vmatprep.subr.bf16.mxu1 %v1312_v23  ;;  %v980_v60 = vld [vmem:[%s1509_s7 + $0x1] ss:$0 sm:$0xff]  ;;  %s1276_s7 = scalar_lea.vmem %s915_s18, 128 }
 0x215   :  { %1125 = vmatpush3.bf16.msra.mxu0 %v1202_v13  ;;  %p1277_p8 = scmp.ne.s32.totalorder %s915_s18, %s1276_s7  ;;  %p1282_p10 = scmp.lt.s32.totalorder %s1276_s7, %s1276_s7 }
 0x216   :  { %1126 = vmatprep.subr.bf16.mxu0 %v1312_v23 }
 0x217   :  { %1145 = vmatpush3.bf16.msra.mxu1 %v1210_v34  ;;  %p1283_p11 = por %p1282_p10, %p1281_p9 }
 0x218   :  { %1146 = vmatprep.subr.bf16.mxu1 %v1312_v23 }
 0x219   :  { %1127 = vmatpush3.bf16.msra.mxu0 %v1203_v25  ;;  %p1284_p12 = pnand %p1283_p11, %p1277_p8 }
 0x21a   :  { %1128 = vmatprep.subr.bf16.mxu0 %v1312_v23 }
 0x21b   :  { %1147 = vmatpush3.bf16.msra.mxu1 %v1211_v35 }
 0x21c   :  { %1148 = vmatprep.subr.bf16.mxu1 %v1312_v23 }
 0x21d   :  { %1129 = vmatpush3.bf16.msra.mxu0 %v1204_v26 }
 0x21e   :  { %1130 = vmatprep.subr.bf16.mxu0 %v1312_v23 }
 0x21f   :  { %1149 = vmatpush3.bf16.msra.mxu1 %v1212_v36 }
 0x220   :  { %1150 = vmatprep.subr.bf16.mxu1 %v1312_v23 }
 0x221   :  { %1131 = vmatpush3.bf16.msra.mxu0 %v1205_v27 }
 0x222   :  { %1132 = vmatprep.subr.bf16.mxu0 %v1312_v23 }
 0x223   :  { %1151 = vmatpush3.bf16.msra.mxu1 %v1213_v37 }
 0x224   :  { %1152 = vmatprep.subr.bf16.mxu1 %v1312_v23 }
 0x225   :  { %1133 = vmatpush3.bf16.msra.mxu0 %v1206_v28 }
 0x226   :  { %1134 = vmatprep.subr.bf16.mxu0 %v1312_v23 }
 0x227   :  { %1153 = vmatpush3.bf16.msra.mxu1 %v1214_v38 }
 0x228   :  { %1154 = vmatprep.subr.bf16.mxu1 %v1312_v23 }
 0x229   :  { %1135 = vmatpush3.bf16.msra.mxu0 %v1207_v29 }
 0x22a   :  { %1160 = vmatprep.subr.bf16.mxu0 %v1312_v23 }
 0x22b   :  { %1155 = vmatpush3.bf16.msra.mxu1 %v1215_v39 }
 0x22c   :  { %1137 = vmatmul.mubr.bf16.vlgmr.msra.gmra.mrb[0].mxu0 %v562_v31 }
 0x22d   :  { %1176 = vmatprep.mubr.msk.bf16.mxu0 %vm1313_vm5, %v1312_v23  ;;  %1161 = vmatpush3.bf16.msra.mxu0 %v1216_v52 }
 0x22e   :  { %1162 = vmatprep.subr.bf16.mxu0 %v1312_v23 }
 0x231   :  { %1163 = vmatpush3.bf16.msra.mxu0 %v1217_v53 }
 0x232   :  { %1164 = vmatprep.subr.bf16.mxu0 %v1312_v23 }
 0x235   :  { %1165 = vmatpush3.bf16.msra.mxu0 %v1218_v54 }
 0x236   :  { %1166 = vmatprep.subr.bf16.mxu0 %v1312_v23 }
 0x239   :  { %1167 = vmatpush3.bf16.msra.mxu0 %v1219_v55 }
 0x23a   :  { %1168 = vmatprep.subr.bf16.mxu0 %v1312_v23 }
 0x23d   :  { %1169 = vmatpush3.bf16.msra.mxu0 %v1220_v56 }
 0x23e   :  { %1170 = vmatprep.subr.bf16.mxu0 %v1312_v23 }
 0x241   :  { %1171 = vmatpush3.bf16.msra.mxu0 %v1221_v57 }
 0x242   :  { %1172 = vmatprep.subr.bf16.mxu0 %v1312_v23 }
 0x245   :  { %1173 = vmatpush3.bf16.msra.mxu0 %v1222_v58 }
 0x246   :  { %1174 = vmatprep.subr.bf16.mxu0 %v1312_v23 }
 0x249   :  { %1175 = vmatpush3.bf16.msra.mxu0 %v1223_v59 }
 0x2ff   :  { %v668_v41 = vpop.f32.mrb[0].mxu0 }
 0x300   :  { %v669_v42 = vadd.f32 %v969_v40, %v668_v41  ;;  %v1138_v43 = vpop.f32.mrb[1].mxu0 }
 0x301   :  { %v671_v44 = vpop.f32.mrb[2].mxu0 }
 0x302   :  { %v978_v45 = vmul.f32 -1.442695, %v669_v42  ;;  %v1139_v46 = vpop.f32.mrb[3].mxu0 }
 0x304   :  { %1224 = vpow2.f32 %v978_v45 }
 0x30e   :  { %v1225_v47 = vpop.eup %1224 }
 0x30f   :  { %v677_v48 = vadd.f32 1.0, %v1225_v47 }
 0x311   :  { %1226 = vrcp.f32 %v677_v48 }
 0x31b   :  { %v1227_v49 = vpop.eup %1226 }
 0x31c   :  { %v680_v50 = vmul.f32 %v1227_v49, %v669_v42 }
 0x31e   :  { %v681_v51 = vpack.c.bf16 %v680_v50, %v680_v50 }
 0x320   :  { %1157 = vmatmul.mubr.bf16.vlgmr.msra.gmra.mrb[0].mxu1 %v681_v51 }
 0x3f3   :  { %v789_v61 = vpop.f32.mrb[0].mxu1 }
 0x3f4   :  { %v790_v62 = vadd.f32 %v980_v60, %v789_v61  ;;  %v1158_v63 = vpop.f32.mrb[1].mxu1 }
 0x3f5   :  { %v792_v0 = vpop.f32.mrb[2].mxu1 }
 0x3f6   :  { %v989_v1 = vmul.f32 -1.442695, %v790_v62  ;;  %v1159_v2 = vpop.f32.mrb[3].mxu1 }
 0x3f8   :  { %1228 = vpow2.f32 %v989_v1 }
 0x402   :  { %v1229_v3 = vpop.eup %1228 }
 0x403   :  { %v798_v4 = vadd.f32 1.0, %v1229_v3 }
 0x405   :  { %1230 = vrcp.f32 %v798_v4 }
 0x40f   :  { %v1231_v5 = vpop.eup %1230 }
 0x410   :  { %v801_v6 = vmul.f32 %v1231_v5, %v790_v62 }
 0x412   :  { %v802_v7 = vpack.c.bf16 %v801_v6, %v801_v6 }
 0x414   :  { %1177 = vmatmul.mubr.bf16.vlgmr.msra.gmra.mrb[4].mxu0 %v802_v7 }
 0x4e7   :  { %v901_v8 = vpop.f32.mrb[4].mxu0 }
 0x4e8   :  { %907 = vst [vmem:[#allocation12] sm:$0xff] %v901_v8  ;;  %v1178_v9 = vpop.f32.mrb[5].mxu0 }
 0x4e9   :  { %v904_v10 = vpop.f32.mrb[6].mxu0 }
 0x4ea   :  { %1287 = shalt.err (!%p1284_p12)
}
 0x4eb   :  { %s1288_s8 = scalar_lea.hbm %s1511_s9, 128 }
 0x4ec   :  { %p1289_p13 = scmp.ne.s32.totalorder %s1511_s9, %s1288_s8  ;;  %p1292_p0 = scmp.lt.u32.totalorder %s1288_s8, %s1511_s9 }
 0x4ee   :  { %p1294_p1 = pnand %p1292_p0, %p1289_p13 }
 0x4f0   :  { %1297 = shalt.err (!%p1294_p1)
}
 0x4f1   :  { %917 = dma.vmem_to_hbm [thread:$0]  %s915_s18, 128, %s1511_s9, [#allocation9]   ;;  %v1179_v11 = vpop.f32.mrb[7].mxu0 }
 0x4f2   :  { %1302 = dma.done.wait [#allocation9], 128  }
 0x4f3   :  { %1303 = vsyncadd [#allocation9], 4294967168 }
 0x4f4   :  { %921 = vsyncpa [#allocation8], 1 }
 0x4f5   :  { %922 = vsyncpa [#allocation11], 1 }
 0x4f6   :  { %923 = vsyncpa [#allocation9], 1 }

</bundles_post_ra>
